<compile_context>
chip_gen: v7x
topology: tpu7x:2x2x1
jax: 0.10.0
libtpu: 0.0.40
codegen_flags: <defaults>
</compile_context>

<pallas_src>
import jax
import jax.numpy as jnp
from jax.experimental import pallas as pl
from jax.experimental.pallas import tpu as pltpu


def _round_up(n, m):
    return ((n + m - 1) // m) * m


def dueling_head_kernel(
    x_ref,    # [TILE_B, H]    (f32 or bf16)
    w1_ref,   # [H, 2H]        fused layer-1 weight  [w1a | w1s]
    b1_ref,   # [1, 2H]        fused layer-1 bias    (f32)
    w2_ref,   # [2H, O+1]      block-diagonal layer-2 weight -> [adv | v]
    b2_ref,   # [1, O+1]       fused layer-2 bias    (f32)
    q_ref,    # [TILE_B, O]    (f32)
):
    x = x_ref[...]

    # Single fused layer-1 matmul covering both branches (f32 accumulation),
    # bias add + ReLU on the f32 result.
    h = jnp.dot(x, w1_ref[...], preferred_element_type=jnp.float32) + b1_ref[...]
    h = jnp.maximum(h, 0.0)                                   # [TILE_B, 2H] f32

    # Single fused layer-2 matmul: block-diagonal weight keeps the branches
    # independent.  Cast h to the weight dtype (no-op in the f32 path) so the
    # MXU sees matching-precision operands in the bf16 path.
    out = (
        jnp.dot(h.astype(w2_ref.dtype), w2_ref[...],
                preferred_element_type=jnp.float32)
        + b2_ref[...]
    )                                                          # [TILE_B, O+1]

    O = q_ref.shape[-1]
    adv = out[:, :O]                                           # lane-0 aligned
    v = out[:, O:O + 1]                                        # [TILE_B, 1]

    # Dueling combine: q = v + adv - mean(adv, axis=1, keepdims=True)
    adv_mean = jnp.mean(adv, axis=1, keepdims=True)
    q_ref[...] = (v + adv - adv_mean).astype(q_ref.dtype)


def defence_network_forward(x, fused, *, tile_b_cap=1024, ensure_two_tiles=True):
    """x: [B, H]; fused: dict from fuse_params().  Returns q: [B, O] float32."""
    B, H = x.shape
    O_plus1 = fused["w2"].shape[1]
    O = O_plus1 - 1

    # Inputs follow the (possibly bf16) fused-weight dtype; biases stay f32.
    in_dtype = fused["w1"].dtype
    if x.dtype != in_dtype:
        x = x.astype(in_dtype)

    # Pad batch only up to the sublane multiple (8) — no full pad-to-tile pass.
    B8 = _round_up(max(B, 8), 8)
    if B8 != B:
        x = jnp.pad(x, ((0, B8 - B), (0, 0)))

    # Large batch tiles: amortize the ~0.35 us per-grid-step pipeline overhead.
    TILE_B = min(tile_b_cap, B8)
    if ensure_two_tiles and B8 >= 16:
        # Keep >=2 grid steps so the "parallel" axis can feed v7x's second TC.
        TILE_B = min(TILE_B, _round_up(pl.cdiv(B8, 2), 8))
    TILE_B = _round_up(TILE_B, 8)
    grid = (pl.cdiv(B8, TILE_B),)   # ragged last tile: OOB writes are clipped

    flops = 2 * B8 * H * (2 * H) + 2 * B8 * (2 * H) * O_plus1
    bytes_accessed = (
        B8 * H * jnp.dtype(in_dtype).itemsize           # x
        + H * 2 * H * jnp.dtype(in_dtype).itemsize      # w1
        + 2 * H * 4                                     # b1 (f32)
        + 2 * H * O_plus1 * jnp.dtype(in_dtype).itemsize  # w2
        + O_plus1 * 4                                   # b2 (f32)
        + B8 * O * 4                                    # q (f32)
    )

    q = pl.pallas_call(
        dueling_head_kernel,
        out_shape=jax.ShapeDtypeStruct((B8, O), jnp.float32),
        grid_spec=pltpu.PrefetchScalarGridSpec(
            num_scalar_prefetch=0,
            grid=grid,
            in_specs=[
                pl.BlockSpec((TILE_B, H), lambda i: (i, 0)),        # x tile
                pl.BlockSpec((H, 2 * H), lambda i: (0, 0)),         # w1 resident
                pl.BlockSpec((1, 2 * H), lambda i: (0, 0)),         # b1 resident
                pl.BlockSpec((2 * H, O_plus1), lambda i: (0, 0)),   # w2 resident
                pl.BlockSpec((1, O_plus1), lambda i: (0, 0)),       # b2 resident
            ],
            out_specs=pl.BlockSpec((TILE_B, O), lambda i: (i, 0)),
        ),
        compiler_params=pltpu.CompilerParams(
            dimension_semantics=("parallel",),   # megacore on v7x
        ),
        cost_estimate=pl.CostEstimate(
            flops=flops, transcendentals=0, bytes_accessed=bytes_accessed
        ),
    )(x, fused["w1"], fused["b1"], fused["w2"], fused["b2"])

    return q if B8 == B else q[:B]


def init_params(key, hidden_size, output_size):
    """Deterministic init mimicking torch.nn.Linear default U(-1/sqrt(fan_in), +)."""
    ks = jax.random.split(key, 8)

    def lin(kw, kb, fan_in, fan_out):
        bound = 1.0 / jnp.sqrt(jnp.float32(fan_in))
        w = jax.random.uniform(kw, (fan_in, fan_out), jnp.float32, -bound, bound)
        b = jax.random.uniform(kb, (1, fan_out), jnp.float32, -bound, bound)
        return w, b

    w1s, b1s = lin(ks[0], ks[1], hidden_size, hidden_size)
    w2s, b2s = lin(ks[2], ks[3], hidden_size, 1)
    w1a, b1a = lin(ks[4], ks[5], hidden_size, hidden_size)
    w2a, b2a = lin(ks[6], ks[7], hidden_size, output_size)
    return dict(w1s=w1s, b1s=b1s, w2s=w2s, b2s=b2s,
                w1a=w1a, b1a=b1a, w2a=w2a, b2a=b2a)


def fuse_params(p, dtype=jnp.float32):
    """One-time wrapper-side fusion of the two branches into 2 weights + 2 biases.

    Layer-1 hidden is [h_a | h_s]; layer-2 block-diagonal weight produces
    [adv | v] so adv starts at lane 0.  Weights may be cast to bf16; biases
    stay f32 (they are added to the f32 MXU accumulator).
    """
    H = p["w1s"].shape[0]
    O = p["w2a"].shape[1]
    w1 = jnp.concatenate([p["w1a"], p["w1s"]], axis=1)          # [H, 2H]
    b1 = jnp.concatenate([p["b1a"], p["b1s"]], axis=1)          # [1, 2H]
    w2 = jnp.zeros((2 * H, O + 1), jnp.float32)
    w2 = w2.at[:H, :O].set(p["w2a"])                            # adv block (lanes 0..O-1)
    w2 = w2.at[H:, O:].set(p["w2s"])                            # v block   (lane O)
    b2 = jnp.concatenate([p["b2a"], p["b2s"]], axis=1)          # [1, O+1]
    return dict(w1=w1.astype(dtype), b1=b1, w2=w2.astype(dtype), b2=b2)


def reference_forward(x, p):
    """Pure-JAX reference of the PyTorch forward, for the correctness check."""
    h_s = jnp.maximum(x @ p["w1s"] + p["b1s"], 0.0)
    v = h_s @ p["w2s"] + p["b2s"]
    h_a = jnp.maximum(x @ p["w1a"] + p["b1a"], 0.0)
    adv = h_a @ p["w2a"] + p["b2a"]
    return v + adv - jnp.mean(adv, axis=1, keepdims=True)


if __name__ == "__main__":
    key = jax.random.PRNGKey(0)
    k_x, k_p = jax.random.split(key)

    batch = 8
    hidden_size = 32
    output_size = 8   # number of actions (outputSize)

    x = jax.random.normal(k_x, (batch, hidden_size), dtype=jnp.float32)
    params = init_params(k_p, hidden_size, output_size)
    q_ref = reference_forward(x, params)

    # f32 path: exact correctness check against the pure-JAX reference.
    fused_f32 = fuse_params(params, dtype=jnp.float32)
    q = jax.block_until_ready(defence_network_forward(x, fused_f32))
    assert q.shape == (batch, output_size)
    assert jnp.allclose(q, q_ref, atol=1e-5, rtol=1e-5), "f32 mismatch vs reference"

    # bf16-input path (halves dominant HBM traffic); looser tolerance expected.
    fused_bf16 = fuse_params(params, dtype=jnp.bfloat16)
    q_bf16 = jax.block_until_ready(defence_network_forward(x, fused_bf16))
    assert q_bf16.shape == (batch, output_size)
    assert jnp.allclose(q_bf16, q_ref, atol=5e-2, rtol=5e-2), "bf16 mismatch vs reference"

    # Larger batch exercising the ragged cdiv grid and the >=2-tile parallel axis.
    x_big = jax.random.normal(k_x, (1000, hidden_size), dtype=jnp.float32)
    q_big = jax.block_until_ready(defence_network_forward(x_big, fused_f32))
    q_big_ref = reference_forward(x_big, params)
    assert q_big.shape == (1000, output_size)
    assert jnp.allclose(q_big, q_big_ref, atol=1e-4, rtol=1e-4), "big-batch mismatch"

    print("KERNEL_OK")
</pallas_src>

<mosaic_0001>
module attributes {stable_mosaic.version = 11 : i64} {
  func.func @dueling_head_kernel(%arg0: i32, %arg1: memref<8x32xf32, #tpu.memory_space<vmem>>, %arg2: memref<32x64xf32, #tpu.memory_space<vmem>>, %arg3: memref<1x64xf32, #tpu.memory_space<vmem>>, %arg4: memref<64x9xf32, #tpu.memory_space<vmem>>, %arg5: memref<1x9xf32, #tpu.memory_space<vmem>>, %arg6: memref<8x8xf32, #tpu.memory_space<vmem>>) attributes {dimension_semantics = [#tpu.dimension_semantics<parallel>], iteration_bounds = array<i64: 1>, scalar_prefetch = 0 : i64, scratch_operands = 0 : i64, tpu.core_type = #tpu.core_type<tc>, window_params = [{transform_indices = @transform_0, window_bounds = array<i64: 8, 32>}, {pipeline_mode = #tpu.pipeline_mode<synchronous>, transform_indices = @transform_1, window_bounds = array<i64: 32, 64>}, {pipeline_mode = #tpu.pipeline_mode<synchronous>, transform_indices = @transform_2, window_bounds = array<i64: 1, 64>}, {pipeline_mode = #tpu.pipeline_mode<synchronous>, transform_indices = @transform_3, window_bounds = array<i64: 64, 9>}, {pipeline_mode = #tpu.pipeline_mode<synchronous>, transform_indices = @transform_4, window_bounds = array<i64: 1, 9>}, {transform_indices = @transform_5, window_bounds = array<i64: 8, 8>}]} {
    %c0 = arith.constant 0 : index
    %c0_0 = arith.constant 0 : index
    %0 = vector.load %arg1[%c0, %c0_0] : memref<8x32xf32, #tpu.memory_space<vmem>>, vector<8x32xf32>
    %c0_1 = arith.constant 0 : index
    %c0_2 = arith.constant 0 : index
    %1 = vector.load %arg2[%c0_1, %c0_2] : memref<32x64xf32, #tpu.memory_space<vmem>>, vector<32x64xf32>
    %cst = arith.constant dense<0.000000e+00> : vector<8x64xf32>
    %2 = tpu.matmul %0, %1, %cst {dimension_numbers = #tpu.dot_dimension_numbers<[1], [0], [0], [1], [0, 0, 1, 1], [], []>} : vector<8x32xf32>, vector<32x64xf32>, vector<8x64xf32> -> vector<8x64xf32>
    %c0_3 = arith.constant 0 : index
    %c0_4 = arith.constant 0 : index
    %3 = vector.load %arg3[%c0_3, %c0_4] : memref<1x64xf32, #tpu.memory_space<vmem>>, vector<1x64xf32>
    %4 = vector.broadcast %3 : vector<1x64xf32> to vector<8x64xf32>
    %5 = arith.addf %2, %4 : vector<8x64xf32>
    %cst_5 = arith.constant 0.000000e+00 : f32
    %6 = vector.broadcast %cst_5 : f32 to vector<8x64xf32>
    %7 = arith.maximumf %5, %6 : vector<8x64xf32>
    %c0_6 = arith.constant 0 : index
    %c0_7 = arith.constant 0 : index
    %8 = vector.load %arg4[%c0_6, %c0_7] : memref<64x9xf32, #tpu.memory_space<vmem>>, vector<64x9xf32>
    %cst_8 = arith.constant dense<0.000000e+00> : vector<8x9xf32>
    %9 = tpu.matmul %7, %8, %cst_8 {dimension_numbers = #tpu.dot_dimension_numbers<[1], [0], [0], [1], [0, 0, 1, 1], [], []>} : vector<8x64xf32>, vector<64x9xf32>, vector<8x9xf32> -> vector<8x9xf32>
    %c0_9 = arith.constant 0 : index
    %c0_10 = arith.constant 0 : index
    %10 = vector.load %arg5[%c0_9, %c0_10] : memref<1x9xf32, #tpu.memory_space<vmem>>, vector<1x9xf32>
    %11 = vector.broadcast %10 : vector<1x9xf32> to vector<8x9xf32>
    %12 = arith.addf %9, %11 : vector<8x9xf32>
    %13 = vector.extract_strided_slice %12 {offsets = [0, 0], sizes = [8, 8], strides = [1, 1]} : vector<8x9xf32> to vector<8x8xf32>
    %14 = vector.extract_strided_slice %12 {offsets = [0, 8], sizes = [8, 1], strides = [1, 1]} : vector<8x9xf32> to vector<8x1xf32>
    %cst_11 = arith.constant dense<0.000000e+00> : vector<8xf32>
    %15 = vector.multi_reduction <add>, %13, %cst_11 [1] : vector<8x8xf32> to vector<8xf32>
    %16 = vector.shape_cast %15 : vector<8xf32> to vector<8x1xf32>
    %cst_12 = arith.constant 8.000000e+00 : f32
    %17 = vector.broadcast %cst_12 : f32 to vector<8x1xf32>
    %18 = arith.divf %16, %17 : vector<8x1xf32>
    %19 = vector.broadcast %14 : vector<8x1xf32> to vector<8x8xf32>
    %20 = arith.addf %19, %13 : vector<8x8xf32>
    %21 = vector.broadcast %18 : vector<8x1xf32> to vector<8x8xf32>
    %22 = arith.subf %20, %21 : vector<8x8xf32>
    %c0_13 = arith.constant 0 : index
    %c0_14 = arith.constant 0 : index
    %23 = vector.load %arg6[%c0_13, %c0_14] : memref<8x8xf32, #tpu.memory_space<vmem>>, vector<8x8xf32>
    tpu.vector_store %arg6[%c0_13, %c0_14], %22 {strides = array<i32>} : memref<8x8xf32, #tpu.memory_space<vmem>>, vector<8x8xf32>,
    return
  }
  func.func @transform_0(%arg0: i32) -> (i32, i32) {
    %c0_i32 = arith.constant 0 : i32
    %c0_i32_0 = arith.constant 0 : i32
    return %arg0, %c0_i32 : i32, i32
  }
  func.func @transform_1(%arg0: i32) -> (i32, i32) {
    %c0_i32 = arith.constant 0 : i32
    %c0_i32_0 = arith.constant 0 : i32
    %c0_i32_1 = arith.constant 0 : i32
    return %c0_i32, %c0_i32_0 : i32, i32
  }
  func.func @transform_2(%arg0: i32) -> (i32, i32) {
    %c0_i32 = arith.constant 0 : i32
    %c0_i32_0 = arith.constant 0 : i32
    %c0_i32_1 = arith.constant 0 : i32
    return %c0_i32, %c0_i32_0 : i32, i32
  }
  func.func @transform_3(%arg0: i32) -> (i32, i32) {
    %c0_i32 = arith.constant 0 : i32
    %c0_i32_0 = arith.constant 0 : i32
    %c0_i32_1 = arith.constant 0 : i32
    return %c0_i32, %c0_i32_0 : i32, i32
  }
  func.func @transform_4(%arg0: i32) -> (i32, i32) {
    %c0_i32 = arith.constant 0 : i32
    %c0_i32_0 = arith.constant 0 : i32
    %c0_i32_1 = arith.constant 0 : i32
    return %c0_i32, %c0_i32_0 : i32, i32
  }
  func.func @transform_5(%arg0: i32) -> (i32, i32) {
    %c0_i32 = arith.constant 0 : i32
    %c0_i32_0 = arith.constant 0 : i32
    return %arg0, %c0_i32 : i32, i32
  }
}

</mosaic_0001>

<bundles_post_ra>
// kernel: tpu_custom_call.1
= control target key start
LH: loop header
LB: loop body
LE: loop exit
PB: predicated region body
PF: predicated region fallthrough
CT: control target
= control target key end

     0   :  { %v321_v3 = vmov 0.0|0.0   ;;  %vm322_vm0 = vmmov 0   ;;  %v323_v6 = vmov 0.0   ;;  %s413_s0 = inlined_call_operand.vmem [shape: f32[8,32], index: 0, kind: input, shape index: {}]   ;;  %s414_s1 = inlined_call_operand.vmem [shape: f32[32,64], index: 1, kind: input, shape index: {}]   ;;  %s415_s2 = inlined_call_operand.vmem [shape: f32[1,64], index: 2, kind: input, shape index: {}]   ;;  %s416_s3 = inlined_call_operand.vmem [shape: f32[64,9], index: 3, kind: input, shape index: {}]   ;;  %s417_s4 = inlined_call_operand.vmem [shape: f32[1,9], index: 4, kind: input, shape index: {}]   ;;  %s418_s5 = inlined_call_operand.hbm [shape: f32[8,8], index: 5, kind: output, shape index: {}]  }
   0x1   :  { %v22_v0 = vld [vmem:[%s414_s1] sm:$0xff]  ;;  %v23_v1 = vld [vmem:[%s414_s1 + $0x8] sm:$0xff]  ;;  %v24_v2 = vld [vmem:[%s414_s1 + $0x10] sm:$0xff]  ;;  %273 = vmatprep.subr.bf16.mxu0 %v321_v3  ;;  %251 = vmatprep.mubr.msk.f32.mxu0 %vm322_vm0, %v323_v6 }
   0x2   :  { %v274_v4 = vpack.c.bf16 %v23_v1, %v22_v0  ;;  %v25_v5 = vld [vmem:[%s414_s1 + $0x18] sm:$0xff]  ;;  %v108_v7 = vld [vmem:[%s416_s3] sm:$0xff]  ;;  %279 = vmatprep.subr.bf16.mxu1 %v321_v3  ;;  %v109_v8 = vld [vmem:[%s416_s3 + $0x8] sm:$0xff]  ;;  %270 = vmatprep.mubr.msk.f32.mxu1 %vm322_vm0, %v323_v6 }
   0x3   :  { %v110_v9 = vld [vmem:[%s416_s3 + $0x10] sm:$0xff]  ;;  %v111_v10 = vld [vmem:[%s416_s3 + $0x18] sm:$0xff]  ;;  %v277_v11 = vpack.c.bf16 %v25_v5, %v24_v2  ;;  %v280_v12 = vpack.c.bf16 %v109_v8, %v108_v7 }
   0x4   :  { %275 = vmatpush3.bf16.msra.mxu0 %v274_v4 }
   0x5   :  { %276 = vmatprep.subr.bf16.mxu0 %v321_v3 }
   0x6   :  { %10 = vsyncpa [#allocation3], 0  ;;  %281 = vmatpush3.bf16.msra.mxu1 %v280_v12  ;;  %v283_v13 = vpack.c.bf16 %v111_v10, %v110_v9  ;;  %v112_v14 = vld [vmem:[%s416_s3 + $0x20] sm:$0xff]  ;;  %v113_v15 = vld [vmem:[%s416_s3 + $0x28] sm:$0xff]  ;;  %vm33_vm1 = vcmask 261120   ;;  %vm123_vm2 = vcmask 523264  }
   0x7   :  { %282 = vmatprep.subr.bf16.mxu1 %v321_v3  ;;  %v21_v16 = vld [vmem:[%s413_s0] sm:$0xff]  ;;  %v286_v17 = vpack.c.bf16 %v113_v15, %v112_v14  ;;  %v114_v18 = vld [vmem:[%s416_s3 + $0x30] sm:$0xff]  ;;  %v115_v19 = vld [vmem:[%s416_s3 + $0x38] sm:$0xff]  ;;  %v324_v26 = vmov 8   ;;  %vm197_vm3 = vcmask 64512  }
   0x8   :  { %278 = vmatpush3.bf16.msra.mxu0 %v277_v11  ;;  %v289_v20 = vpack.c.bf16 %v115_v19, %v114_v18  ;;  %v225_v21 = vld [vmem:[%s415_s2] ss:$0 sm:$0xff]  ;;  %296 = vset.pattern.permute.xlu0 %v324_v26  ;;  %s325_s2 = smov [#allocation2]  }
   0x9   :  { %v227_v27 = vld [vmem:[%s417_s4] ss:$0 sm:$0xff]  ;;  %s217_s3 = sshll.u32 %s325_s2, 4  ;;  %s218_s3 = int_to_ptr.vmem [resolvable:$true] %s217_s3 }
   0xa   :  { %284 = vmatpush3.bf16.msra.mxu1 %v283_v13  ;;  %s297_s21 = scalar_lea.vmem %s218_s3, 128  ;;  %p302_p1 = scmp.lt.s32.totalorder %s218_s3, %s218_s3 }
   0xb   :  { %252 = vmatmul.mubr.msk.f32.vlgmr.msra.gmra.mrb[0].mxu0 %vm33_vm1, %v21_v16  ;;  %285 = vmatprep.subr.bf16.mxu1 %v321_v3  ;;  %p298_p0 = scmp.ne.s32.totalorder %s218_s3, %s297_s21  ;;  %p303_p2 = scmp.lt.s32.totalorder %s297_s21, %s297_s21 }
   0xd   :  { %p304_p3 = por %p303_p2, %p302_p1 }
   0xe   :  { %287 = vmatpush3.bf16.msra.mxu1 %v286_v17 }
   0xf   :  { %288 = vmatprep.subr.bf16.mxu1 %v321_v3  ;;  %p305_p4 = pnand %p304_p3, %p298_p0 }
  0x12   :  { %290 = vmatpush3.bf16.msra.mxu1 %v289_v20 }
  0xde   :  { %v103_v22 = vpop.f32.mrb[0].mxu0 }
  0xdf   :  { %v104_v23 = vadd.f32 %v225_v21, %v103_v22  ;;  %v253_v24 = vpop.f32.mrb[1].mxu0 }
  0xe1   :  { %v107_v25 = vmax.f32 %v104_v23, 0.0 }
  0xe3   :  { %271 = vmatmul.mubr.msk.f32.vlgmr.msra.gmra.mrb[0].mxu1 %vm123_vm2, %v107_v25 }
 0x1b6   :  { %v193_v28 = vpop.f32.mrb[0].mxu1 }
 0x1b7   :  { %v194_v29 = vadd.f32 %v227_v27, %v193_v28  ;;  %v272_v30 = vpop.f32.mrb[1].mxu1 }
 0x1b9   :  { %v198_v31 = vsel %vm197_vm3, %v194_v29, 0.0 }
 0x1ba   :  { %199 = vadd.xlane.f32.xlu0 %v198_v31 }
 0x1d0   :  { %205 = vperm.xlu0 %296, %v194_v29  }
 0x247   :  { %v200_v32 = vpop.xlane.xlu0 %199 }
 0x248   :  { %v202_v34 = vmul.f32 0.125, %v200_v32 }
 0x24f   :  { %v206_v33 = vpop.permute.xlu0 %205 }
 0x250   :  { %v208_v35 = vadd.f32 %v206_v33, %v194_v29 }
 0x252   :  { %v209_v36 = vsub.f32 %v208_v35, %v202_v34 }
 0x254   :  { %210 = vst.msk [vmem:[#allocation2] sm:$0xff] %vm197_vm3, %v209_v36 }
 0x255   :  { %308 = shalt.err (!%p305_p4)
}
 0x256   :  { %s309_s23 = scalar_lea.hbm %s418_s5, 128 }
 0x257   :  { %p310_p5 = scmp.ne.s32.totalorder %s418_s5, %s309_s23  ;;  %p313_p6 = scmp.lt.u32.totalorder %s309_s23, %s418_s5 }
 0x259   :  { %p315_p7 = pnand %p313_p6, %p310_p5 }
 0x25b   :  { %318 = shalt.err (!%p315_p7)
}
 0x25c   :  { %220 = dma.vmem_to_hbm [thread:$0]  %s218_s3, 128, %s418_s5, [#allocation3]  }
 0x25d   :  { %319 = dma.done.wait [#allocation3], 128  }
 0x25e   :  { %320 = vsyncadd [#allocation3], 4294967168 }
 0x25f   :  { %224 = vsyncpa [#allocation3], 1 }

</bundles_post_ra>
